<compile_context>
chip_gen: v7x
topology: tpu7x:2x2x1
jax: 0.10.0
libtpu: 0.0.40
codegen_flags: <defaults>
</compile_context>

<pallas_src>
import functools

import numpy as np
import jax
import jax.numpy as jnp
from jax.experimental import pallas as pl
from jax.experimental.pallas import tpu as pltpu


# --------------------------------------------------------------------------
# helpers
# --------------------------------------------------------------------------
def _cdiv(a, b):
    return -(-a // b)


def _round_up(x, m):
    return ((x + m - 1) // m) * m


_COL_THRESHOLD = 2048   # tile the column axis only when rows are wider than this
_COL_TILE = 1024        # column tile used in that case (multiple of 128)


@functools.lru_cache(maxsize=None)
def _mxu_threshold():
    """K (= n_sfh) crossover between the VPU broadcast-scale path and the MXU."""
    try:
        kind = jax.devices()[0].device_kind.lower()
    except Exception:
        return 8
    for old in ("v4", "v5", "v6"):
        if old in kind:
            return 16       # HBM/store-bound: unrolled VPU path free up to ~16
    return 6                # v7x and newer: VALU-bound sooner -> MXU early


def _pick_tiles(batch, n_in, n_out, *, col_block=None, budget_bytes=6 << 20):
    """Pick (batch_tile, column_tile).

    Batch tile: multiple of 8, <= 1024 rows, double-buffered in+out blocks fit
    `budget_bytes`, and additionally capped at round_up(ceil(B/4), 8) so the
    grid has >= 4 steps whenever the batch is big enough (>= 2 per v7x TC).
    Column tile: full logical width unless n_out is very wide (or forced).
    """
    if col_block is None:
        cb = n_out if n_out <= _COL_THRESHOLD else _COL_TILE
    else:
        cb = min(col_block, n_out)
    if cb != n_out:
        cb = max(128, (cb // 128) * 128)      # legal, lane-dense block width

    per_row_bytes = 4 * 2 * (n_in + cb)       # f32, double-buffered in + out
    tb = max(8, (budget_bytes // per_row_bytes) // 8 * 8)
    tb = min(tb, 1024)
    tb = min(tb, _round_up(_cdiv(batch, 4), 8))
    return max(tb, 8), cb


def _vmem_limit(block_footprint_bytes):
    """Explicit scoped-VMEM limit derived from the actual block footprint."""
    return int(min(64 << 20,
                   max(2 * block_footprint_bytes + (4 << 20), 16 << 20)))


# --------------------------------------------------------------------------
# kernels
# --------------------------------------------------------------------------
def _simplex_identity_kernel(p_ref, o_ref):
    """sfh_bins is None: simplex transform only (no scatter matrix).
    Block width == logical n_tau, so the row-sum sees no pad lanes."""
    x = -jnp.log(1.0 - p_ref[...].astype(jnp.float32))
    o_ref[...] = (x / jnp.sum(x, axis=-1, keepdims=True)).astype(o_ref.dtype)


def _scatter_kernel(p_ref, w_ref, o_ref, *, apply_simplex, use_mxu):
    """Fused (optional) simplex transform + bin-scatter contraction."""
    p = p_ref[...].astype(jnp.float32)
    if apply_simplex:
        x = -jnp.log(1.0 - p)
        p = x / jnp.sum(x, axis=-1, keepdims=True)
    w = w_ref[...].astype(jnp.float32)
    if use_mxu:
        out = jnp.dot(p, w, preferred_element_type=jnp.float32,
                      precision=jax.lax.Precision.HIGHEST)
    else:
        # K is tiny (n_sfh): exact f32 VPU broadcast-scale keeps the MXU out.
        k = p.shape[-1]
        out = p[:, 0:1] * w[0:1, :]
        for i in range(1, k):
            out = out + p[:, i:i + 1] * w[i:i + 1, :]
    o_ref[...] = out.astype(o_ref.dtype)


# --------------------------------------------------------------------------
# pallas_call wrappers (batch-tiled, pipelined, no pad / no post-slice)
# --------------------------------------------------------------------------
def _run_simplex_identity(params, n_tau):
    b = params.shape[0]
    # columns cannot be tiled here (row-wise normalization needs the full row)
    tb, _ = _pick_tiles(b, n_tau, n_tau, col_block=n_tau)
    nb = _cdiv(b, tb)
    footprint = 4 * 4 * tb * n_tau            # double-buffered in + out, f32
    return pl.pallas_call(
        _simplex_identity_kernel,
        out_shape=jax.ShapeDtypeStruct((b, n_tau), params.dtype),
        grid=(nb,),
        in_specs=[pl.BlockSpec((tb, n_tau), lambda i: (i, 0))],
        out_specs=pl.BlockSpec((tb, n_tau), lambda i: (i, 0)),
        compiler_params=pltpu.CompilerParams(
            dimension_semantics=("parallel",),
            vmem_limit_bytes=_vmem_limit(footprint)),
        cost_estimate=pl.CostEstimate(
            flops=3 * b * n_tau,
            transcendentals=b * n_tau,
            bytes_accessed=8 * b * n_tau),
    )(params)


def _run_scatter(p, w, n_tau, apply_simplex, *, col_block=None):
    b, k = p.shape
    tb, cb = _pick_tiles(b, k, n_tau, col_block=col_block)
    nb, nj = _cdiv(b, tb), _cdiv(n_tau, cb)
    use_mxu = k > _mxu_threshold()
    kernel = functools.partial(
        _scatter_kernel, apply_simplex=apply_simplex, use_mxu=use_mxu)

    p_spec = pl.BlockSpec((tb, k), lambda i, j: (i, 0))      # revisit-skipped
    out_spec = pl.BlockSpec((tb, cb), lambda i, j: (i, j))   # lane-dense store

    def call(w_spec, w_bufs):
        footprint = 4 * (2 * tb * k + 2 * tb * cb + w_bufs * k * cb)
        return pl.pallas_call(
            kernel,
            out_shape=jax.ShapeDtypeStruct((b, n_tau), p.dtype),
            grid=(nb, nj),
            in_specs=[p_spec, w_spec],
            out_specs=out_spec,
            compiler_params=pltpu.CompilerParams(
                dimension_semantics=("parallel", "arbitrary"),
                vmem_limit_bytes=_vmem_limit(footprint)),
            cost_estimate=pl.CostEstimate(
                flops=2 * b * k * n_tau,
                transcendentals=(b * k) if apply_simplex else 0,
                bytes_accessed=4 * (b * k + k * n_tau + b * n_tau)),
        )(p, w)

    if nj > 1:
        # Column-tiled path: W blocks change each step -> keep double-buffering.
        return call(pl.BlockSpec((k, cb), lambda i, j: (0, j)), 2)
    # W is grid-resident (constant index_map): single-buffer it to free VMEM.
    try:
        return call(pl.BlockSpec((k, cb), lambda i, j: (0, 0),
                                 pipeline_mode=pl.Buffered(1)), 1)
    except Exception:
        # Fallback if this Pallas build rejects single-buffering.
        return call(pl.BlockSpec((k, cb), lambda i, j: (0, 0)), 2)


# --------------------------------------------------------------------------
# module
# --------------------------------------------------------------------------
class DiscreteSFH:
    """JAX/Pallas re-implementation of starduster's DiscreteSFH."""

    def __init__(self, sfh_bins=None, simplex_transform=False):
        self._args = (sfh_bins, simplex_transform)

    def enable(self, n_tau):
        # (takes n_tau directly instead of an SSPLibrary object)
        sfh_bins, simplex_transform = self._args
        if sfh_bins is None:
            n_sfh = n_tau
        else:
            self._check_sfh_bins(sfh_bins, n_tau)
            n_sfh = len(sfh_bins)
        if n_sfh == 1:
            param_names = []
            bounds_default = np.zeros((0, 2))
        elif n_sfh == 2:
            param_names = ["c_0"]
            bounds_default = np.array([0.0, 1.0])
        else:
            param_names = [f"c_{i}" for i in range(n_sfh)]
            bounds_default = np.tile((0.0, 1.0), (n_sfh, 1))
        self.simplex_transform = simplex_transform
        self.sfh_bins = sfh_bins
        self.n_tau_ssp = n_tau
        self.n_sfh = n_sfh
        self.col_block = None     # optional forced column tile (testing / huge n_tau)

        self.w = None
        self.const_row = None
        if sfh_bins is not None:
            if n_sfh == 1:
                row = np.zeros((n_tau,), np.float32)
                idx_b, idx_e = sfh_bins[0]
                row[idx_b:idx_e] = 1.0 / (idx_e - idx_b)
                self.const_row = jnp.asarray(row)
            else:
                # W at logical width n_tau (block dim == full array dim is legal).
                w = np.zeros((n_sfh, n_tau), np.float32)
                for i, (idx_b, idx_e) in enumerate(sfh_bins):
                    w[i, idx_b:idx_e] = 1.0 / (idx_e - idx_b)
                self.w = jnp.asarray(w)
        return param_names, bounds_default

    @staticmethod
    def _check_sfh_bins(sfh_bins, n_tau):
        idx_prev = -1
        for idx_b, idx_e in sfh_bins:
            assert 0 <= idx_b <= n_tau and 0 <= idx_e <= n_tau
            assert idx_b < idx_e
            assert idx_b >= idx_prev
            idx_prev = idx_e

    def forward(self, params):
        params = jnp.asarray(params, jnp.float32)
        if self.sfh_bins is None:
            if self.simplex_transform and self.n_sfh > 2:
                return _run_simplex_identity(params, self.n_tau_ssp)
            return params  # pure identity -> no kernel launch needed
        if self.n_sfh == 1:
            # constant SFH row; params only supply the batch size
            return jnp.broadcast_to(self.const_row,
                                    (params.shape[0], self.n_tau_ssp))
        if self.n_sfh == 2:
            # glue: build [c, 1-c] so the bin scatter is a 2-term scale/add
            p = jnp.concatenate([params, 1.0 - params], axis=-1)
            apply_simplex = False
        else:
            p = params
            apply_simplex = self.simplex_transform
        return _run_scatter(p, self.w, self.n_tau_ssp, apply_simplex,
                            col_block=self.col_block)

    __call__ = forward


# ----------------------- pure-numpy reference (torch semantics) -------------
def _reference(params, sfh_bins, simplex, n_tau):
    params = np.asarray(params, np.float64)
    n_sfh = n_tau if sfh_bins is None else len(sfh_bins)
    if simplex and n_sfh > 2:
        x = -np.log(1.0 - params)
        params = x / x.sum(-1, keepdims=True)
    if sfh_bins is None:
        return params
    sfh = np.zeros((params.shape[0], n_tau))
    if n_sfh == 1:
        b, e = sfh_bins[0]
        sfh[:, b:e] = 1.0 / (e - b)
    elif n_sfh == 2:
        (b0, e0), (b1, e1) = sfh_bins
        sfh[:, b0:e0] = params / (e0 - b0)
        sfh[:, b1:e1] = (1.0 - params) / (e1 - b1)
    else:
        for i, (b, e) in enumerate(sfh_bins):
            sfh[:, b:e] = params[:, i, None] / (e - b)
    return sfh


if __name__ == "__main__":
    key = jax.random.PRNGKey(0)
    k1, k2, k3, k4, k5, k6 = jax.random.split(key, 6)

    # Case 1: multi-bin SFH with simplex transform (fused scatter, VPU path).
    batch, n_tau = 8, 128
    sfh_bins = [(0, 32), (32, 64), (64, 96), (96, 128)]
    mod = DiscreteSFH(sfh_bins=sfh_bins, simplex_transform=True)
    mod.enable(n_tau)
    params = jax.random.uniform(k1, (batch, len(sfh_bins)),
                                minval=0.05, maxval=0.95, dtype=jnp.float32)
    out = jax.block_until_ready(mod(params))
    ref = _reference(np.asarray(params), sfh_bins, True, n_tau)
    np.testing.assert_allclose(np.asarray(out), ref, rtol=1e-5, atol=1e-6)

    # Case 2: sfh_bins is None -> simplex-only kernel (no identity matmul).
    mod_none = DiscreteSFH(sfh_bins=None, simplex_transform=True)
    mod_none.enable(n_tau)
    params_full = jax.random.uniform(k2, (batch, n_tau),
                                     minval=0.05, maxval=0.95,
                                     dtype=jnp.float32)
    out_none = jax.block_until_ready(mod_none(params_full))
    ref_none = _reference(np.asarray(params_full), None, True, n_tau)
    np.testing.assert_allclose(np.asarray(out_none), ref_none,
                               rtol=1e-5, atol=1e-6)

    # Case 3: two-bin SFH (single parameter c_0) -> 2-term VPU scale/add.
    bins2 = [(0, 64), (64, 128)]
    mod2 = DiscreteSFH(sfh_bins=bins2, simplex_transform=False)
    mod2.enable(n_tau)
    params2 = jax.random.uniform(k3, (batch, 1),
                                 minval=0.05, maxval=0.95, dtype=jnp.float32)
    out2 = jax.block_until_ready(mod2(params2))
    ref2 = _reference(np.asarray(params2), bins2, False, n_tau)
    np.testing.assert_allclose(np.asarray(out2), ref2, rtol=1e-5, atol=1e-6)

    # Case 4: n_tau not a multiple of 128 and batch not a multiple of 8 ->
    # ragged batch/column handling is done by Pallas masking (no pad, no slice).
    n_tau4 = 96
    bins4 = [(0, 16), (16, 48), (48, 96)]
    mod4 = DiscreteSFH(sfh_bins=bins4, simplex_transform=True)
    mod4.enable(n_tau4)
    params4 = jax.random.uniform(k4, (5, len(bins4)),
                                 minval=0.05, maxval=0.95, dtype=jnp.float32)
    out4 = jax.block_until_ready(mod4(params4))
    ref4 = _reference(np.asarray(params4), bins4, True, n_tau4)
    np.testing.assert_allclose(np.asarray(out4), ref4, rtol=1e-5, atol=1e-6)

    # Case 5: force the column-tiled (2-D grid) path: ragged last column block
    # and ragged last batch block together.
    n_tau5 = 320
    bins5 = [(0, 40), (40, 100), (100, 180), (180, 260), (260, 320)]
    mod5 = DiscreteSFH(sfh_bins=bins5, simplex_transform=True)
    mod5.enable(n_tau5)
    mod5.col_block = 128          # exercise the 2-D grid path at small n_tau
    params5 = jax.random.uniform(k5, (9, len(bins5)),
                                 minval=0.05, maxval=0.95, dtype=jnp.float32)
    out5 = jax.block_until_ready(mod5(params5))
    ref5 = _reference(np.asarray(params5), bins5, True, n_tau5)
    np.testing.assert_allclose(np.asarray(out5), ref5, rtol=1e-5, atol=1e-6)

    # Case 6: many bins (K=20 > all chip thresholds) -> MXU path, f32 HIGHEST.
    n_tau6 = 160
    bins6 = [(8 * i, 8 * (i + 1)) for i in range(20)]
    mod6 = DiscreteSFH(sfh_bins=bins6, simplex_transform=True)
    mod6.enable(n_tau6)
    params6 = jax.random.uniform(k6, (16, len(bins6)),
                                 minval=0.05, maxval=0.95, dtype=jnp.float32)
    out6 = jax.block_until_ready(mod6(params6))
    ref6 = _reference(np.asarray(params6), bins6, True, n_tau6)
    np.testing.assert_allclose(np.asarray(out6), ref6, rtol=1e-5, atol=1e-6)

    print("KERNEL_OK")
</pallas_src>

<mosaic_0001>
module attributes {stable_mosaic.version = 11 : i64} {
  func.func @_scatter_kernel(%arg0: i32, %arg1: i32, %arg2: memref<8x4xf32, #tpu.memory_space<vmem>>, %arg3: memref<4x128xf32, #tpu.memory_space<vmem>>, %arg4: memref<8x128xf32, #tpu.memory_space<vmem>>) attributes {dimension_semantics = [#tpu.dimension_semantics<parallel>, #tpu.dimension_semantics<arbitrary>], iteration_bounds = array<i64: 1, 1>, scalar_prefetch = 0 : i64, scratch_operands = 0 : i64, tpu.core_type = #tpu.core_type<tc>, window_params = [{transform_indices = @transform_0, window_bounds = array<i64: 8, 4>}, {pipeline_mode = #tpu.pipeline_mode<synchronous>, transform_indices = @transform_1, window_bounds = array<i64: 4, 128>}, {transform_indices = @transform_2, window_bounds = array<i64: 8, 128>}]} {
    %c0 = arith.constant 0 : index
    %c0_0 = arith.constant 0 : index
    %0 = vector.load %arg2[%c0, %c0_0] : memref<8x4xf32, #tpu.memory_space<vmem>>, vector<8x4xf32>
    %cst = arith.constant 1.000000e+00 : f32
    %1 = vector.broadcast %cst : f32 to vector<8x4xf32>
    %2 = arith.subf %1, %0 : vector<8x4xf32>
    %3 = math.log %2 : vector<8x4xf32>
    %cst_1 = arith.constant 0.000000e+00 : f32
    %4 = vector.broadcast %cst_1 : f32 to vector<8x4xf32>
    %5 = arith.subf %4, %3 : vector<8x4xf32>
    %cst_2 = arith.constant dense<0.000000e+00> : vector<8xf32>
    %6 = vector.multi_reduction <add>, %5, %cst_2 [1] : vector<8x4xf32> to vector<8xf32>
    %7 = vector.shape_cast %6 : vector<8xf32> to vector<8x1xf32>
    %8 = vector.broadcast %7 : vector<8x1xf32> to vector<8x4xf32>
    %9 = arith.divf %5, %8 : vector<8x4xf32>
    %c0_3 = arith.constant 0 : index
    %c0_4 = arith.constant 0 : index
    %10 = vector.load %arg3[%c0_3, %c0_4] : memref<4x128xf32, #tpu.memory_space<vmem>>, vector<4x128xf32>
    %11 = vector.extract_strided_slice %9 {offsets = [0, 0], sizes = [8, 1], strides = [1, 1]} : vector<8x4xf32> to vector<8x1xf32>
    %12 = vector.extract_strided_slice %10 {offsets = [0, 0], sizes = [1, 128], strides = [1, 1]} : vector<4x128xf32> to vector<1x128xf32>
    %13 = vector.broadcast %11 : vector<8x1xf32> to vector<8x128xf32>
    %14 = vector.broadcast %12 : vector<1x128xf32> to vector<8x128xf32>
    %15 = arith.mulf %13, %14 : vector<8x128xf32>
    %16 = vector.extract_strided_slice %9 {offsets = [0, 1], sizes = [8, 1], strides = [1, 1]} : vector<8x4xf32> to vector<8x1xf32>
    %17 = vector.extract_strided_slice %10 {offsets = [1, 0], sizes = [1, 128], strides = [1, 1]} : vector<4x128xf32> to vector<1x128xf32>
    %18 = vector.broadcast %16 : vector<8x1xf32> to vector<8x128xf32>
    %19 = vector.broadcast %17 : vector<1x128xf32> to vector<8x128xf32>
    %20 = arith.mulf %18, %19 : vector<8x128xf32>
    %21 = arith.addf %15, %20 : vector<8x128xf32>
    %22 = vector.extract_strided_slice %9 {offsets = [0, 2], sizes = [8, 1], strides = [1, 1]} : vector<8x4xf32> to vector<8x1xf32>
    %23 = vector.extract_strided_slice %10 {offsets = [2, 0], sizes = [1, 128], strides = [1, 1]} : vector<4x128xf32> to vector<1x128xf32>
    %24 = vector.broadcast %22 : vector<8x1xf32> to vector<8x128xf32>
    %25 = vector.broadcast %23 : vector<1x128xf32> to vector<8x128xf32>
    %26 = arith.mulf %24, %25 : vector<8x128xf32>
    %27 = arith.addf %21, %26 : vector<8x128xf32>
    %28 = vector.extract_strided_slice %9 {offsets = [0, 3], sizes = [8, 1], strides = [1, 1]} : vector<8x4xf32> to vector<8x1xf32>
    %29 = vector.extract_strided_slice %10 {offsets = [3, 0], sizes = [1, 128], strides = [1, 1]} : vector<4x128xf32> to vector<1x128xf32>
    %30 = vector.broadcast %28 : vector<8x1xf32> to vector<8x128xf32>
    %31 = vector.broadcast %29 : vector<1x128xf32> to vector<8x128xf32>
    %32 = arith.mulf %30, %31 : vector<8x128xf32>
    %33 = arith.addf %27, %32 : vector<8x128xf32>
    %c0_5 = arith.constant 0 : index
    %c0_6 = arith.constant 0 : index
    %34 = vector.load %arg4[%c0_5, %c0_6] : memref<8x128xf32, #tpu.memory_space<vmem>>, vector<8x128xf32>
    tpu.vector_store %arg4[%c0_5, %c0_6], %33 {strides = array<i32>} : memref<8x128xf32, #tpu.memory_space<vmem>>, vector<8x128xf32>,
    return
  }
  func.func @transform_0(%arg0: i32, %arg1: i32) -> (i32, i32) {
    %c0_i32 = arith.constant 0 : i32
    %c0_i32_0 = arith.constant 0 : i32
    return %arg0, %c0_i32 : i32, i32
  }
  func.func @transform_1(%arg0: i32, %arg1: i32) -> (i32, i32) {
    %c0_i32 = arith.constant 0 : i32
    %c0_i32_0 = arith.constant 0 : i32
    %c0_i32_1 = arith.constant 0 : i32
    return %c0_i32, %c0_i32_0 : i32, i32
  }
  func.func @transform_2(%arg0: i32, %arg1: i32) -> (i32, i32) {
    %c0_i32 = arith.constant 0 : i32
    return %arg0, %arg1 : i32, i32
  }
}

module attributes {stable_mosaic.version = 11 : i64} {
  func.func @_scatter_kernel(%arg0: i32, %arg1: i32, %arg2: memref<8x4xf32, #tpu.memory_space<vmem>>, %arg3: memref<4x128xf32, #tpu.memory_space<vmem>>, %arg4: memref<8x128xf32, #tpu.memory_space<vmem>>) attributes {dimension_semantics = [#tpu.dimension_semantics<parallel>, #tpu.dimension_semantics<arbitrary>], iteration_bounds = array<i64: 1, 1>, scalar_prefetch = 0 : i64, scratch_operands = 0 : i64, tpu.core_type = #tpu.core_type<tc>, window_params = [{transform_indices = @transform_0, window_bounds = array<i64: 8, 4>}, {pipeline_mode = #tpu.pipeline_mode<synchronous>, transform_indices = @transform_1, window_bounds = array<i64: 4, 128>}, {transform_indices = @transform_2, window_bounds = array<i64: 8, 128>}]} {
    %c0 = arith.constant 0 : index
    %c0_0 = arith.constant 0 : index
    %0 = vector.load %arg2[%c0, %c0_0] : memref<8x4xf32, #tpu.memory_space<vmem>>, vector<8x4xf32>
    %cst = arith.constant 1.000000e+00 : f32
    %1 = vector.broadcast %cst : f32 to vector<8x4xf32>
    %2 = arith.subf %1, %0 : vector<8x4xf32>
    %3 = math.log %2 : vector<8x4xf32>
    %cst_1 = arith.constant 0.000000e+00 : f32
    %4 = vector.broadcast %cst_1 : f32 to vector<8x4xf32>
    %5 = arith.subf %4, %3 : vector<8x4xf32>
    %cst_2 = arith.constant dense<0.000000e+00> : vector<8xf32>
    %6 = vector.multi_reduction <add>, %5, %cst_2 [1] : vector<8x4xf32> to vector<8xf32>
    %7 = vector.shape_cast %6 : vector<8xf32> to vector<8x1xf32>
    %8 = vector.broadcast %7 : vector<8x1xf32> to vector<8x4xf32>
    %9 = arith.divf %5, %8 : vector<8x4xf32>
    %c0_3 = arith.constant 0 : index
    %c0_4 = arith.constant 0 : index
    %10 = vector.load %arg3[%c0_3, %c0_4] : memref<4x128xf32, #tpu.memory_space<vmem>>, vector<4x128xf32>
    %11 = vector.extract_strided_slice %9 {offsets = [0, 0], sizes = [8, 1], strides = [1, 1]} : vector<8x4xf32> to vector<8x1xf32>
    %12 = vector.extract_strided_slice %10 {offsets = [0, 0], sizes = [1, 128], strides = [1, 1]} : vector<4x128xf32> to vector<1x128xf32>
    %13 = vector.broadcast %11 : vector<8x1xf32> to vector<8x128xf32>
    %14 = vector.broadcast %12 : vector<1x128xf32> to vector<8x128xf32>
    %15 = arith.mulf %13, %14 : vector<8x128xf32>
    %16 = vector.extract_strided_slice %9 {offsets = [0, 1], sizes = [8, 1], strides = [1, 1]} : vector<8x4xf32> to vector<8x1xf32>
    %17 = vector.extract_strided_slice %10 {offsets = [1, 0], sizes = [1, 128], strides = [1, 1]} : vector<4x128xf32> to vector<1x128xf32>
    %18 = vector.broadcast %16 : vector<8x1xf32> to vector<8x128xf32>
    %19 = vector.broadcast %17 : vector<1x128xf32> to vector<8x128xf32>
    %20 = arith.mulf %18, %19 : vector<8x128xf32>
    %21 = arith.addf %15, %20 : vector<8x128xf32>
    %22 = vector.extract_strided_slice %9 {offsets = [0, 2], sizes = [8, 1], strides = [1, 1]} : vector<8x4xf32> to vector<8x1xf32>
    %23 = vector.extract_strided_slice %10 {offsets = [2, 0], sizes = [1, 128], strides = [1, 1]} : vector<4x128xf32> to vector<1x128xf32>
    %24 = vector.broadcast %22 : vector<8x1xf32> to vector<8x128xf32>
    %25 = vector.broadcast %23 : vector<1x128xf32> to vector<8x128xf32>
    %26 = arith.mulf %24, %25 : vector<8x128xf32>
    %27 = arith.addf %21, %26 : vector<8x128xf32>
    %28 = vector.extract_strided_slice %9 {offsets = [0, 3], sizes = [8, 1], strides = [1, 1]} : vector<8x4xf32> to vector<8x1xf32>
    %29 = vector.extract_strided_slice %10 {offsets = [3, 0], sizes = [1, 128], strides = [1, 1]} : vector<4x128xf32> to vector<1x128xf32>
    %30 = vector.broadcast %28 : vector<8x1xf32> to vector<8x128xf32>
    %31 = vector.broadcast %29 : vector<1x128xf32> to vector<8x128xf32>
    %32 = arith.mulf %30, %31 : vector<8x128xf32>
    %33 = arith.addf %27, %32 : vector<8x128xf32>
    %c0_5 = arith.constant 0 : index
    %c0_6 = arith.constant 0 : index
    %34 = vector.load %arg4[%c0_5, %c0_6] : memref<8x128xf32, #tpu.memory_space<vmem>>, vector<8x128xf32>
    tpu.vector_store %arg4[%c0_5, %c0_6], %33 {strides = array<i32>} : memref<8x128xf32, #tpu.memory_space<vmem>>, vector<8x128xf32>,
    return
  }
  func.func @transform_0(%arg0: i32, %arg1: i32) -> (i32, i32) {
    %c0_i32 = arith.constant 0 : i32
    %c0_i32_0 = arith.constant 0 : i32
    return %arg0, %c0_i32 : i32, i32
  }
  func.func @transform_1(%arg0: i32, %arg1: i32) -> (i32, i32) {
    %c0_i32 = arith.constant 0 : i32
    %c0_i32_0 = arith.constant 0 : i32
    %c0_i32_1 = arith.constant 0 : i32
    return %c0_i32, %c0_i32_0 : i32, i32
  }
  func.func @transform_2(%arg0: i32, %arg1: i32) -> (i32, i32) {
    %c0_i32 = arith.constant 0 : i32
    return %arg0, %arg1 : i32, i32
  }
}

</mosaic_0001>

<bundles_post_ra>
// kernel: tpu_custom_call.1
= control target key start
LH: loop header
LB: loop body
LE: loop exit
PB: predicated region body
PF: predicated region fallthrough
CT: control target
= control target key end

     0   :  { %s155_s0 = inlined_call_operand.vmem [shape: f32[8,4], index: 0, kind: input, shape index: {}]   ;;  %s156_s1 = inlined_call_operand.vmem [shape: f32[4,128], index: 1, kind: input, shape index: {}]   ;;  %s157_s2 = inlined_call_operand.hbm [shape: f32[8,128], index: 2, kind: output, shape index: {}]  }
   0x1   :  { %v12_v0 = vld [vmem:[%s155_s0] sm:$0xff] }
   0x2   :  { %7 = vsyncpa [#allocation3], 0  ;;  %v13_v1 = vsub.f32 1.0, %v12_v0  ;;  %vm17_vm0 = vcmask 31744   ;;  %v117_v6 = vmov 1   ;;  %v118_v7 = vmov 0  }
   0x3   :  { %85 = vset.pattern.permute.xlu1 %v117_v6  ;;  %84 = vset.pattern.permute.xlu0 %v118_v7  ;;  %v119_v11 = vmov 2   ;;  %v120_v12 = vmov 3   ;;  %v29_v13 = vlaneseq  ;;  %v23_v17 = vld [vmem:[%s156_s1] sm:$0xf]  ;;  %s121_s12 = smov [#allocation2]  }
   0x4   :  { %89 = vlog2.f32 %v13_v1  ;;  %s71_s13 = sshll.u32 %s121_s12, 4  ;;  %s72_s13 = int_to_ptr.vmem [resolvable:$true] %s71_s13 }
   0x5   :  { %v30_v14 = vshrl.u32 %v29_v13, 7  ;;  %s93_s1 = scalar_lea.vmem %s72_s13, 128  ;;  %p98_p1 = scmp.lt.s32.totalorder %s72_s13, %s72_s13 }
   0x6   :  { %p94_p0 = scmp.ne.s32.totalorder %s72_s13, %s93_s1  ;;  %p99_p2 = scmp.lt.s32.totalorder %s93_s1, %s93_s1 }
   0x7   :  { %v40_v15 = vsub.s32 1, %v30_v14  ;;  %v31_v16 = vsub.s32 0, %v30_v14  ;;  %v50_v18 = vsub.s32 2, %v30_v14  ;;  %v60_v24 = vsub.s32 3, %v30_v14 }
   0x8   :  { %p100_p3 = por %p99_p2, %p98_p1 }
   0x9   :  { %v41_v20 = vrot.slane %v23_v17, %v40_v15  ;;  %v32_v21 = vrot.slane %v23_v17, %v31_v16  ;;  %v51_v23 = vrot.slane %v23_v17, %v50_v18  ;;  %v61_v29 = vrot.slane %v23_v17, %v60_v24 }
   0xa   :  { %p101_p4 = pnand %p100_p3, %p94_p0 }
   0xe   :  { %v90_v2 = vpop.eup %89 }
   0xf   :  { %v15_v3 = vmul.f32 0.6931472, %v90_v2 }
  0x11   :  { %v16_v4 = vsub.f32 0.0, %v15_v3 }
  0x13   :  { %v18_v5 = vsel %vm17_vm0, %v16_v4, 0.0 }
  0x14   :  { %19 = vadd.xlane.f32.xlu0 %v18_v5 }
  0xa1   :  { %v20_v8 = vpop.xlane.xlu0 %19 }
  0xa2   :  { %91 = vrcp.f32 %v20_v8 }
  0xac   :  { %v92_v9 = vpop.eup %91 }
  0xad   :  { %v22_v10 = vmul.f32 %v92_v9, %v16_v4 }
  0xaf   :  { %35 = vperm.xlu1 %85, %v22_v10   ;;  %26 = vperm.xlu0 %84, %v22_v10  }
  0xb3   :  { %86 = vset.pattern.permute.xlu1 %v119_v11  ;;  %88 = vset.pattern.permute.xlu0 %v120_v12 }
  0xb4   :  { %45 = vperm.xlu1 %86, %v22_v10  }
  0xb8   :  { %87 = vset.pattern.permute.xlu1 %v120_v12 }
  0xb9   :  { %55 = vperm.xlu1 %87, %v22_v10  }
 0x12e   :  { %v36_v19 = vpop.permute.xlu1 %35  ;;  %v27_v22 = vpop.permute.xlu0 %26 }
 0x12f   :  { %v42_v25 = vmul.f32 %v41_v20, %v36_v19  ;;  %v33_v26 = vmul.f32 %v32_v21, %v27_v22 }
 0x131   :  { %v43_v30 = vadd.f32 %v42_v25, %v33_v26 }
 0x133   :  { %v46_v27 = vpop.permute.xlu1 %45 }
 0x134   :  { %v52_v28 = vmul.f32 %v51_v23, %v46_v27 }
 0x136   :  { %v53_v32 = vadd.f32 %v52_v28, %v43_v30 }
 0x138   :  { %v56_v31 = vpop.permute.xlu1 %55 }
 0x139   :  { %v62_v33 = vmul.f32 %v61_v29, %v56_v31 }
 0x13b   :  { %v63_v34 = vadd.f32 %v62_v33, %v53_v32 }
 0x13d   :  { %64 = vst [vmem:[#allocation2] sm:$0xff] %v63_v34 }
 0x13e   :  { %104 = shalt.err (!%p101_p4)
}
 0x13f   :  { %s105_s16 = scalar_lea.hbm %s157_s2, 128 }
 0x140   :  { %p106_p5 = scmp.ne.s32.totalorder %s157_s2, %s105_s16  ;;  %p109_p6 = scmp.lt.u32.totalorder %s105_s16, %s157_s2 }
 0x142   :  { %p111_p7 = pnand %p109_p6, %p106_p5 }
 0x144   :  { %114 = shalt.err (!%p111_p7)
}
 0x145   :  { %74 = dma.vmem_to_hbm [thread:$0]  %s72_s13, 128, %s157_s2, [#allocation3]  }
 0x146   :  { %115 = dma.done.wait [#allocation3], 128  }
 0x147   :  { %116 = vsyncadd [#allocation3], 4294967168 }
 0x148   :  { %78 = vsyncpa [#allocation3], 1 }

// kernel: tpu_custom_call.1
= control target key start
LH: loop header
LB: loop body
LE: loop exit
PB: predicated region body
PF: predicated region fallthrough
CT: control target
= control target key end

     0   :  { %s155_s0 = inlined_call_operand.vmem [shape: f32[8,4], index: 0, kind: input, shape index: {}]   ;;  %s156_s1 = inlined_call_operand.vmem [shape: f32[4,128], index: 1, kind: input, shape index: {}]   ;;  %s157_s2 = inlined_call_operand.hbm [shape: f32[8,128], index: 2, kind: output, shape index: {}]  }
   0x1   :  { %v12_v0 = vld [vmem:[%s155_s0] sm:$0xff] }
   0x2   :  { %7 = vsyncpa [#allocation3], 0  ;;  %v13_v1 = vsub.f32 1.0, %v12_v0  ;;  %vm17_vm0 = vcmask 31744   ;;  %v117_v6 = vmov 1   ;;  %v118_v7 = vmov 0  }
   0x3   :  { %85 = vset.pattern.permute.xlu1 %v117_v6  ;;  %84 = vset.pattern.permute.xlu0 %v118_v7  ;;  %v119_v11 = vmov 2   ;;  %v120_v12 = vmov 3   ;;  %v29_v13 = vlaneseq  ;;  %v23_v17 = vld [vmem:[%s156_s1] sm:$0xf]  ;;  %s121_s12 = smov [#allocation2]  }
   0x4   :  { %89 = vlog2.f32 %v13_v1  ;;  %s71_s13 = sshll.u32 %s121_s12, 4  ;;  %s72_s13 = int_to_ptr.vmem [resolvable:$true] %s71_s13 }
   0x5   :  { %v30_v14 = vshrl.u32 %v29_v13, 7  ;;  %s93_s1 = scalar_lea.vmem %s72_s13, 128  ;;  %p98_p1 = scmp.lt.s32.totalorder %s72_s13, %s72_s13 }
   0x6   :  { %p94_p0 = scmp.ne.s32.totalorder %s72_s13, %s93_s1  ;;  %p99_p2 = scmp.lt.s32.totalorder %s93_s1, %s93_s1 }
   0x7   :  { %v40_v15 = vsub.s32 1, %v30_v14  ;;  %v31_v16 = vsub.s32 0, %v30_v14  ;;  %v50_v18 = vsub.s32 2, %v30_v14  ;;  %v60_v24 = vsub.s32 3, %v30_v14 }
   0x8   :  { %p100_p3 = por %p99_p2, %p98_p1 }
   0x9   :  { %v41_v20 = vrot.slane %v23_v17, %v40_v15  ;;  %v32_v21 = vrot.slane %v23_v17, %v31_v16  ;;  %v51_v23 = vrot.slane %v23_v17, %v50_v18  ;;  %v61_v29 = vrot.slane %v23_v17, %v60_v24 }
   0xa   :  { %p101_p4 = pnand %p100_p3, %p94_p0 }
   0xe   :  { %v90_v2 = vpop.eup %89 }
   0xf   :  { %v15_v3 = vmul.f32 0.6931472, %v90_v2 }
  0x11   :  { %v16_v4 = vsub.f32 0.0, %v15_v3 }
  0x13   :  { %v18_v5 = vsel %vm17_vm0, %v16_v4, 0.0 }
  0x14   :  { %19 = vadd.xlane.f32.xlu0 %v18_v5 }
  0xa1   :  { %v20_v8 = vpop.xlane.xlu0 %19 }
  0xa2   :  { %91 = vrcp.f32 %v20_v8 }
  0xac   :  { %v92_v9 = vpop.eup %91 }
  0xad   :  { %v22_v10 = vmul.f32 %v92_v9, %v16_v4 }
  0xaf   :  { %35 = vperm.xlu1 %85, %v22_v10   ;;  %26 = vperm.xlu0 %84, %v22_v10  }
  0xb3   :  { %86 = vset.pattern.permute.xlu1 %v119_v11  ;;  %88 = vset.pattern.permute.xlu0 %v120_v12 }
  0xb4   :  { %45 = vperm.xlu1 %86, %v22_v10  }
  0xb8   :  { %87 = vset.pattern.permute.xlu1 %v120_v12 }
  0xb9   :  { %55 = vperm.xlu1 %87, %v22_v10  }
 0x12e   :  { %v36_v19 = vpop.permute.xlu1 %35  ;;  %v27_v22 = vpop.permute.xlu0 %26 }
 0x12f   :  { %v42_v25 = vmul.f32 %v41_v20, %v36_v19  ;;  %v33_v26 = vmul.f32 %v32_v21, %v27_v22 }
 0x131   :  { %v43_v30 = vadd.f32 %v42_v25, %v33_v26 }
 0x133   :  { %v46_v27 = vpop.permute.xlu1 %45 }
 0x134   :  { %v52_v28 = vmul.f32 %v51_v23, %v46_v27 }
 0x136   :  { %v53_v32 = vadd.f32 %v52_v28, %v43_v30 }
 0x138   :  { %v56_v31 = vpop.permute.xlu1 %55 }
 0x139   :  { %v62_v33 = vmul.f32 %v61_v29, %v56_v31 }
 0x13b   :  { %v63_v34 = vadd.f32 %v62_v33, %v53_v32 }
 0x13d   :  { %64 = vst [vmem:[#allocation2] sm:$0xff] %v63_v34 }
 0x13e   :  { %104 = shalt.err (!%p101_p4)
}
 0x13f   :  { %s105_s16 = scalar_lea.hbm %s157_s2, 128 }
 0x140   :  { %p106_p5 = scmp.ne.s32.totalorder %s157_s2, %s105_s16  ;;  %p109_p6 = scmp.lt.u32.totalorder %s105_s16, %s157_s2 }
 0x142   :  { %p111_p7 = pnand %p109_p6, %p106_p5 }
 0x144   :  { %114 = shalt.err (!%p111_p7)
}
 0x145   :  { %74 = dma.vmem_to_hbm [thread:$0]  %s72_s13, 128, %s157_s2, [#allocation3]  }
 0x146   :  { %115 = dma.done.wait [#allocation3], 128  }
 0x147   :  { %116 = vsyncadd [#allocation3], 4294967168 }
 0x148   :  { %78 = vsyncpa [#allocation3], 1 }

</bundles_post_ra>
